<compile_context>
chip_gen: v6e
topology: v6e:2x2x1
jax: 0.10.0
libtpu: 0.0.40
codegen_flags: <defaults>
</compile_context>

<pallas_src>
import functools

import jax
import jax.numpy as jnp
from jax.experimental import pallas as pl
from jax.experimental.pallas import tpu as pltpu


def _ckb_mlp_kernel(x_ref, w1a_t_ref, w1b_t_ref, m2a_ref, m2b_ref, wout_ref,
                    o_ref, hm_ref, rm_ref, *, seq_len, heads, bblk):
    """One grid step: `bblk` batch elements, full sequence, full channels.

    x_ref    : (bblk*L, C)    bf16  rows ordered batch-major / seq-minor
    w1a_t_ref: (C, C)         bf16  mat1a.weight^T
    w1b_t_ref: (C, C)         bf16  mat1b.weight^T
    m2a_ref  : (H, L, L)      bf16  tril already applied in prepare_ckb_params
    m2b_ref  : (H, L, L)      bf16  tril already applied
    wout_ref : (C, C)         bf16  vstack_h(Wout[h])  (H*D, C)
    o_ref    : (bblk*L, C)    f32
    hm_ref   : (H, L, bblk*D) bf16 scratch  head-major, batch-packed lanes
    rm_ref   : (bblk*L, C)    bf16 scratch  row-major slab for the linears
    """
    L = seq_len
    H = heads
    C = x_ref.shape[-1]
    D = C // H
    bf16 = x_ref.dtype
    f32 = jnp.float32

    # ---- first linear: one (bblk*L, C) x (C, C) MXU matmul, f32 acc ---------
    h1 = jnp.dot(x_ref[...], w1a_t_ref[...], preferred_element_type=f32)
    h1 = h1.astype(bf16)

    # ---- pack rows -> head-major, batch-packed lanes ------------------------
    # hm[h, k, b*D + d] = h1[b*L + k, h*D + d]
    for b in range(bblk):
        for h in range(H):
            hm_ref[h, :, b * D:(b + 1) * D] = h1[b * L:(b + 1) * L,
                                                 h * D:(h + 1) * D]

    # ---- causal mixing (mat2a) for all heads in one batched MXU issue ------
    za = jnp.einsum('hlk,hkn->hln', m2a_ref[...], hm_ref[...],
                    preferred_element_type=f32)            # (H, L, bblk*D) f32
    za = jnp.maximum(za, 0.0).astype(bf16)

    # ---- unpack back to row-major for the second linear ---------------------
    for b in range(bblk):
        for h in range(H):
            rm_ref[b * L:(b + 1) * L, h * D:(h + 1) * D] = \
                za[h, :, b * D:(b + 1) * D]

    # ---- second linear -------------------------------------------------------
    z2 = jnp.dot(rm_ref[...], w1b_t_ref[...], preferred_element_type=f32)
    z2 = z2.astype(bf16)

    # ---- pack again, causal mixing (mat2b) -----------------------------------
    for b in range(bblk):
        for h in range(H):
            hm_ref[h, :, b * D:(b + 1) * D] = z2[b * L:(b + 1) * L,
                                                 h * D:(h + 1) * D]
    zb = jnp.einsum('hlk,hkn->hln', m2b_ref[...], hm_ref[...],
                    preferred_element_type=f32).astype(bf16)

    # ---- unpack + fused output projection + head-sum -------------------------
    for b in range(bblk):
        for h in range(H):
            rm_ref[b * L:(b + 1) * L, h * D:(h + 1) * D] = \
                zb[h, :, b * D:(b + 1) * D]
    out = jnp.dot(rm_ref[...], wout_ref[...], preferred_element_type=f32)
    # TODO(synk): for C < 128 this store is lane-masked (vst.msk); a lane-dense
    # (bblk, L*C) output layout would need an in-kernel relayout -- skipped.
    o_ref[...] = out.astype(o_ref.dtype)


def _pick_batch_block(batch, d_head, lanes_target=128):
    """Largest divisor of `batch` whose packed lane width (bblk*D) stays at or
    below ~lanes_target, so one grid step gives a lane-dense mixing RHS without
    blowing up the per-step VMEM working set.

    Note: on v7x (2 TensorCores) prefer >=2 grid steps so both cores get work;
    on v5e/v6e (1 TC) the grid is a serial loop, so fewer/larger steps win."""
    want = max(1, lanes_target // max(1, d_head))
    bblk = 1
    for cand in range(1, min(batch, want) + 1):
        if batch % cand == 0:
            bblk = cand
    return bblk


def prepare_ckb_params(w1a, w1b, m2a, m2b, w_out, seq_len):
    """One-time (per weight update) parameter prep, hoisted out of the per-call
    path: Linear transposes, causal masking of the mixing matrices, fused
    output projection flattening, bf16 casts."""
    heads, max_len, _ = m2a.shape
    d_head, dim_in = w_out.shape[1], w_out.shape[2]
    assert seq_len <= max_len
    assert heads * d_head == dim_in
    tril = jnp.tril(jnp.ones((seq_len, seq_len), m2a.dtype))
    return {
        "heads": heads,
        "seq_len": seq_len,
        "w1a_t": jnp.transpose(w1a).astype(jnp.bfloat16),
        "w1b_t": jnp.transpose(w1b).astype(jnp.bfloat16),
        "m2a": (m2a[:, :seq_len, :seq_len] * tril).astype(jnp.bfloat16),
        "m2b": (m2b[:, :seq_len, :seq_len] * tril).astype(jnp.bfloat16),
        # sum_h y_h @ Wout[h] == [y_0 | ... | y_{H-1}] @ vstack_h(Wout[h])
        "wout": w_out.reshape(heads * d_head, dim_in).astype(jnp.bfloat16),
    }


def causal_kron_block_mlp(x, params):
    """x: (B, L, C) float32; params from prepare_ckb_params (seq_len == L)."""
    B, L, C = x.shape
    H = params["heads"]
    assert L == params["seq_len"]
    assert C % H == 0, "dim_in must be divisible by heads"
    D = C // H

    bblk = _pick_batch_block(B, D)
    num_blocks = B // bblk

    x2d = x.reshape(B * L, C).astype(jnp.bfloat16)

    kernel = functools.partial(_ckb_mlp_kernel, seq_len=L, heads=H, bblk=bblk)

    def _invariant_spec(arr):
        # Grid-invariant operand: constant block index -> single-buffer it so
        # it is resident once in VMEM instead of twice.
        zeros = (0,) * arr.ndim
        return pl.BlockSpec(arr.shape, lambda i: zeros,
                            pipeline_mode=pl.Buffered(1))

    out2d = pl.pallas_call(
        kernel,
        out_shape=jax.ShapeDtypeStruct((B * L, C), jnp.float32),
        grid_spec=pltpu.PrefetchScalarGridSpec(
            num_scalar_prefetch=0,
            grid=(num_blocks,),
            in_specs=[
                pl.BlockSpec((bblk * L, C), lambda i: (i, 0)),
                _invariant_spec(params["w1a_t"]),
                _invariant_spec(params["w1b_t"]),
                _invariant_spec(params["m2a"]),
                _invariant_spec(params["m2b"]),
                _invariant_spec(params["wout"]),
            ],
            out_specs=pl.BlockSpec((bblk * L, C), lambda i: (i, 0)),
            scratch_shapes=[
                pltpu.VMEM((H, L, bblk * D), jnp.bfloat16),  # head-major packed
                pltpu.VMEM((bblk * L, C), jnp.bfloat16),     # row-major slab
            ],
        ),
        compiler_params=pltpu.CompilerParams(
            dimension_semantics=("parallel",),
            vmem_limit_bytes=64 * 1024 * 1024,
        ),
    )(x2d, params["w1a_t"], params["w1b_t"], params["m2a"], params["m2b"],
      params["wout"])

    return out2d.reshape(B, L, C)


def _reference(x, w1a, w1b, m2a, m2b, w_out, *, heads):
    """Pure-JAX f32 reference mirroring the PyTorch forward."""
    B, L, C = x.shape
    D = C // heads
    tril = jnp.tril(jnp.ones((L, L), x.dtype))
    h = x @ w1a.T
    h = h.reshape(B, L, heads, D).transpose(0, 2, 1, 3)            # b h l d
    h = jnp.einsum('hlk,bhkd->bhld', m2a[:, :L, :L] * tril, h)
    h = jax.nn.relu(h)
    h = h.transpose(0, 2, 1, 3).reshape(B, L, C)                   # b l (h d)
    h = h @ w1b.T
    h = h.reshape(B, L, heads, D).transpose(0, 2, 1, 3)
    h = jnp.einsum('hlk,bhkd->bhld', m2b[:, :L, :L] * tril, h)
    h = jnp.einsum('bhld,hdc->blc', h, w_out)
    return h


if __name__ == "__main__":
    # Small, module-consistent shapes.
    B, max_len, dim_in, heads = 2, 16, 32, 4
    L = max_len
    D = dim_in // heads

    key = jax.random.PRNGKey(0)
    k_x, k_1a, k_1b, k_2a, k_2b, k_wo = jax.random.split(key, 6)

    # Deterministic parameter init mirroring the module's __init__.
    w1a = jax.random.normal(k_1a, (dim_in, dim_in), jnp.float32) * (1.0 / dim_in)
    w1b = jax.random.normal(k_1b, (dim_in, dim_in), jnp.float32) * (1.0 / dim_in)
    # scale[i, j] = 1 / (i + 1)   (the (ones * [1/k]).T factor in the module)
    row_scale = (1.0 / jnp.arange(1, max_len + 1, dtype=jnp.float32))[:, None]
    scale = jnp.broadcast_to(row_scale, (max_len, max_len))
    m2a = jax.random.normal(k_2a, (heads, max_len, max_len), jnp.float32) * scale
    m2b = jax.random.normal(k_2b, (heads, max_len, max_len), jnp.float32) * scale
    w_out = jax.random.normal(k_wo, (heads, D, dim_in), jnp.float32) * (1.0 / dim_in)

    x = jax.random.normal(k_x, (B, L, dim_in), jnp.float32)

    # One-time prep (hoisted out of the per-call path).
    params = prepare_ckb_params(w1a, w1b, m2a, m2b, w_out, seq_len=L)

    out = causal_kron_block_mlp(x, params)
    out = jax.block_until_ready(out)

    ref = _reference(x, w1a, w1b, m2a, m2b, w_out, heads=heads)
    assert out.shape == (B, L, dim_in)

    # bf16 MXU inputs with f32 accumulation: compare with an error budget
    # scaled to the output magnitude (a structural bug gives O(1) relative
    # errors, bf16 rounding gives ~1%).
    err = float(jnp.max(jnp.abs(out - ref)))
    ref_scale = float(jnp.max(jnp.abs(ref)))
    assert err <= 0.05 * ref_scale, f"max abs err {err} vs ref scale {ref_scale}"

    print("KERNEL_OK")
</pallas_src>

<mosaic_0001>
module attributes {stable_mosaic.version = 11 : i64} {
  func.func @_ckb_mlp_kernel(%arg0: i32, %arg1: memref<32x32xbf16, #tpu.memory_space<vmem>>, %arg2: memref<32x32xbf16, #tpu.memory_space<vmem>>, %arg3: memref<32x32xbf16, #tpu.memory_space<vmem>>, %arg4: memref<4x16x16xbf16, #tpu.memory_space<vmem>>, %arg5: memref<4x16x16xbf16, #tpu.memory_space<vmem>>, %arg6: memref<32x32xbf16, #tpu.memory_space<vmem>>, %arg7: memref<32x32xf32, #tpu.memory_space<vmem>>, %arg8: memref<4x16x16xbf16, #tpu.memory_space<vmem>>, %arg9: memref<32x32xbf16, #tpu.memory_space<vmem>>) attributes {dimension_semantics = [#tpu.dimension_semantics<parallel>], iteration_bounds = array<i64: 1>, scalar_prefetch = 0 : i64, scratch_operands = 2 : i64, tpu.core_type = #tpu.core_type<tc>, window_params = [{transform_indices = @transform_0, window_bounds = array<i64: 32, 32>}, {pipeline_mode = #tpu.pipeline_mode<synchronous>, transform_indices = @transform_1, window_bounds = array<i64: 32, 32>}, {pipeline_mode = #tpu.pipeline_mode<synchronous>, transform_indices = @transform_2, window_bounds = array<i64: 32, 32>}, {pipeline_mode = #tpu.pipeline_mode<synchronous>, transform_indices = @transform_3, window_bounds = array<i64: 4, 16, 16>}, {pipeline_mode = #tpu.pipeline_mode<synchronous>, transform_indices = @transform_4, window_bounds = array<i64: 4, 16, 16>}, {pipeline_mode = #tpu.pipeline_mode<synchronous>, transform_indices = @transform_5, window_bounds = array<i64: 32, 32>}, {transform_indices = @transform_6, window_bounds = array<i64: 32, 32>}]} {
    %c0 = arith.constant 0 : index
    %c0_0 = arith.constant 0 : index
    %0 = vector.load %arg1[%c0, %c0_0] : memref<32x32xbf16, #tpu.memory_space<vmem>>, vector<32x32xbf16>
    %c0_1 = arith.constant 0 : index
    %c0_2 = arith.constant 0 : index
    %1 = vector.load %arg2[%c0_1, %c0_2] : memref<32x32xbf16, #tpu.memory_space<vmem>>, vector<32x32xbf16>
    %cst = arith.constant dense<0.000000e+00> : vector<32x32xf32>
    %2 = tpu.matmul %0, %1, %cst {dimension_numbers = #tpu.dot_dimension_numbers<[1], [0], [0], [1], [0, 0, 1, 1], [], []>} : vector<32x32xbf16>, vector<32x32xbf16>, vector<32x32xf32> -> vector<32x32xf32>
    %3 = arith.truncf %2 : vector<32x32xf32> to vector<32x32xbf16>
    %4 = vector.extract_strided_slice %3 {offsets = [0, 0], sizes = [16, 8], strides = [1, 1]} : vector<32x32xbf16> to vector<16x8xbf16>
    %c0_3 = arith.constant 0 : index
    %c0_4 = arith.constant 0 : index
    %c0_5 = arith.constant 0 : index
    %5 = vector.load %arg8[%c0_3, %c0_4, %c0_5] : memref<4x16x16xbf16, #tpu.memory_space<vmem>>, vector<1x16x8xbf16>
    %6 = vector.shape_cast %5 : vector<1x16x8xbf16> to vector<16x8xbf16>
    %7 = vector.shape_cast %4 : vector<16x8xbf16> to vector<1x16x8xbf16>
    tpu.vector_store %arg8[%c0_3, %c0_4, %c0_5], %7 {strides = array<i32>} : memref<4x16x16xbf16, #tpu.memory_space<vmem>>, vector<1x16x8xbf16>,
    %8 = vector.extract_strided_slice %3 {offsets = [0, 8], sizes = [16, 8], strides = [1, 1]} : vector<32x32xbf16> to vector<16x8xbf16>
    %c1 = arith.constant 1 : index
    %c0_6 = arith.constant 0 : index
    %c0_7 = arith.constant 0 : index
    %9 = vector.load %arg8[%c1, %c0_6, %c0_7] : memref<4x16x16xbf16, #tpu.memory_space<vmem>>, vector<1x16x8xbf16>
    %10 = vector.shape_cast %9 : vector<1x16x8xbf16> to vector<16x8xbf16>
    %11 = vector.shape_cast %8 : vector<16x8xbf16> to vector<1x16x8xbf16>
    tpu.vector_store %arg8[%c1, %c0_6, %c0_7], %11 {strides = array<i32>} : memref<4x16x16xbf16, #tpu.memory_space<vmem>>, vector<1x16x8xbf16>,
    %12 = vector.extract_strided_slice %3 {offsets = [0, 16], sizes = [16, 8], strides = [1, 1]} : vector<32x32xbf16> to vector<16x8xbf16>
    %c2 = arith.constant 2 : index
    %c0_8 = arith.constant 0 : index
    %c0_9 = arith.constant 0 : index
    %13 = vector.load %arg8[%c2, %c0_8, %c0_9] : memref<4x16x16xbf16, #tpu.memory_space<vmem>>, vector<1x16x8xbf16>
    %14 = vector.shape_cast %13 : vector<1x16x8xbf16> to vector<16x8xbf16>
    %15 = vector.shape_cast %12 : vector<16x8xbf16> to vector<1x16x8xbf16>
    tpu.vector_store %arg8[%c2, %c0_8, %c0_9], %15 {strides = array<i32>} : memref<4x16x16xbf16, #tpu.memory_space<vmem>>, vector<1x16x8xbf16>,
    %16 = vector.extract_strided_slice %3 {offsets = [0, 24], sizes = [16, 8], strides = [1, 1]} : vector<32x32xbf16> to vector<16x8xbf16>
    %c3 = arith.constant 3 : index
    %c0_10 = arith.constant 0 : index
    %c0_11 = arith.constant 0 : index
    %17 = vector.load %arg8[%c3, %c0_10, %c0_11] : memref<4x16x16xbf16, #tpu.memory_space<vmem>>, vector<1x16x8xbf16>
    %18 = vector.shape_cast %17 : vector<1x16x8xbf16> to vector<16x8xbf16>
    %19 = vector.shape_cast %16 : vector<16x8xbf16> to vector<1x16x8xbf16>
    tpu.vector_store %arg8[%c3, %c0_10, %c0_11], %19 {strides = array<i32>} : memref<4x16x16xbf16, #tpu.memory_space<vmem>>, vector<1x16x8xbf16>,
    %20 = vector.extract_strided_slice %3 {offsets = [16, 0], sizes = [16, 8], strides = [1, 1]} : vector<32x32xbf16> to vector<16x8xbf16>
    %c0_12 = arith.constant 0 : index
    %c0_13 = arith.constant 0 : index
    %c8 = arith.constant 8 : index
    %21 = vector.load %arg8[%c0_12, %c0_13, %c8] : memref<4x16x16xbf16, #tpu.memory_space<vmem>>, vector<1x16x8xbf16>
    %22 = vector.shape_cast %21 : vector<1x16x8xbf16> to vector<16x8xbf16>
    %23 = vector.shape_cast %20 : vector<16x8xbf16> to vector<1x16x8xbf16>
    tpu.vector_store %arg8[%c0_12, %c0_13, %c8], %23 {strides = array<i32>} : memref<4x16x16xbf16, #tpu.memory_space<vmem>>, vector<1x16x8xbf16>,
    %24 = vector.extract_strided_slice %3 {offsets = [16, 8], sizes = [16, 8], strides = [1, 1]} : vector<32x32xbf16> to vector<16x8xbf16>
    %c1_14 = arith.constant 1 : index
    %c0_15 = arith.constant 0 : index
    %c8_16 = arith.constant 8 : index
    %25 = vector.load %arg8[%c1_14, %c0_15, %c8_16] : memref<4x16x16xbf16, #tpu.memory_space<vmem>>, vector<1x16x8xbf16>
    %26 = vector.shape_cast %25 : vector<1x16x8xbf16> to vector<16x8xbf16>
    %27 = vector.shape_cast %24 : vector<16x8xbf16> to vector<1x16x8xbf16>
    tpu.vector_store %arg8[%c1_14, %c0_15, %c8_16], %27 {strides = array<i32>} : memref<4x16x16xbf16, #tpu.memory_space<vmem>>, vector<1x16x8xbf16>,
    %28 = vector.extract_strided_slice %3 {offsets = [16, 16], sizes = [16, 8], strides = [1, 1]} : vector<32x32xbf16> to vector<16x8xbf16>
    %c2_17 = arith.constant 2 : index
    %c0_18 = arith.constant 0 : index
    %c8_19 = arith.constant 8 : index
    %29 = vector.load %arg8[%c2_17, %c0_18, %c8_19] : memref<4x16x16xbf16, #tpu.memory_space<vmem>>, vector<1x16x8xbf16>
    %30 = vector.shape_cast %29 : vector<1x16x8xbf16> to vector<16x8xbf16>
    %31 = vector.shape_cast %28 : vector<16x8xbf16> to vector<1x16x8xbf16>
    tpu.vector_store %arg8[%c2_17, %c0_18, %c8_19], %31 {strides = array<i32>} : memref<4x16x16xbf16, #tpu.memory_space<vmem>>, vector<1x16x8xbf16>,
    %32 = vector.extract_strided_slice %3 {offsets = [16, 24], sizes = [16, 8], strides = [1, 1]} : vector<32x32xbf16> to vector<16x8xbf16>
    %c3_20 = arith.constant 3 : index
    %c0_21 = arith.constant 0 : index
    %c8_22 = arith.constant 8 : index
    %33 = vector.load %arg8[%c3_20, %c0_21, %c8_22] : memref<4x16x16xbf16, #tpu.memory_space<vmem>>, vector<1x16x8xbf16>
    %34 = vector.shape_cast %33 : vector<1x16x8xbf16> to vector<16x8xbf16>
    %35 = vector.shape_cast %32 : vector<16x8xbf16> to vector<1x16x8xbf16>
    tpu.vector_store %arg8[%c3_20, %c0_21, %c8_22], %35 {strides = array<i32>} : memref<4x16x16xbf16, #tpu.memory_space<vmem>>, vector<1x16x8xbf16>,
    %c0_23 = arith.constant 0 : index
    %c0_24 = arith.constant 0 : index
    %c0_25 = arith.constant 0 : index
    %36 = vector.load %arg4[%c0_23, %c0_24, %c0_25] : memref<4x16x16xbf16, #tpu.memory_space<vmem>>, vector<4x16x16xbf16>
    %c0_26 = arith.constant 0 : index
    %c0_27 = arith.constant 0 : index
    %c0_28 = arith.constant 0 : index
    %37 = vector.load %arg8[%c0_26, %c0_27, %c0_28] : memref<4x16x16xbf16, #tpu.memory_space<vmem>>, vector<4x16x16xbf16>
    "tpu.trace_start"() <{level = 10 : i32, message = "hlk,hkn->hln"}> : () -> ()
    %cst_29 = arith.constant dense<0.000000e+00> : vector<4x16x16xf32>
    %38 = tpu.matmul %36, %37, %cst_29 {dimension_numbers = #tpu.dot_dimension_numbers<[2], [1], [1], [2], [0, 0, 0, 1, 1, 2], [0], [0]>} : vector<4x16x16xbf16>, vector<4x16x16xbf16>, vector<4x16x16xf32> -> vector<4x16x16xf32>
    "tpu.trace_stop"() : () -> ()
    %cst_30 = arith.constant 0.000000e+00 : f32
    %39 = vector.broadcast %cst_30 : f32 to vector<4x16x16xf32>
    %40 = arith.maximumf %38, %39 : vector<4x16x16xf32>
    %41 = arith.truncf %40 : vector<4x16x16xf32> to vector<4x16x16xbf16>
    %42 = vector.extract_strided_slice %41 {offsets = [0, 0, 0], sizes = [1, 16, 8], strides = [1, 1, 1]} : vector<4x16x16xbf16> to vector<1x16x8xbf16>
    %43 = vector.shape_cast %42 : vector<1x16x8xbf16> to vector<16x8xbf16>
    %c0_31 = arith.constant 0 : index
    %c0_32 = arith.constant 0 : index
    %44 = vector.load %arg9[%c0_31, %c0_32] : memref<32x32xbf16, #tpu.memory_space<vmem>>, vector<16x8xbf16>
    tpu.vector_store %arg9[%c0_31, %c0_32], %43 {strides = array<i32>} : memref<32x32xbf16, #tpu.memory_space<vmem>>, vector<16x8xbf16>,
    %45 = vector.extract_strided_slice %41 {offsets = [1, 0, 0], sizes = [1, 16, 8], strides = [1, 1, 1]} : vector<4x16x16xbf16> to vector<1x16x8xbf16>
    %46 = vector.shape_cast %45 : vector<1x16x8xbf16> to vector<16x8xbf16>
    %c0_33 = arith.constant 0 : index
    %c8_34 = arith.constant 8 : index
    %47 = vector.load %arg9[%c0_33, %c8_34] : memref<32x32xbf16, #tpu.memory_space<vmem>>, vector<16x8xbf16>
    tpu.vector_store %arg9[%c0_33, %c8_34], %46 {strides = array<i32>} : memref<32x32xbf16, #tpu.memory_space<vmem>>, vector<16x8xbf16>,
    %48 = vector.extract_strided_slice %41 {offsets = [2, 0, 0], sizes = [1, 16, 8], strides = [1, 1, 1]} : vector<4x16x16xbf16> to vector<1x16x8xbf16>
    %49 = vector.shape_cast %48 : vector<1x16x8xbf16> to vector<16x8xbf16>
    %c0_35 = arith.constant 0 : index
    %c16 = arith.constant 16 : index
    %50 = vector.load %arg9[%c0_35, %c16] : memref<32x32xbf16, #tpu.memory_space<vmem>>, vector<16x8xbf16>
    tpu.vector_store %arg9[%c0_35, %c16], %49 {strides = array<i32>} : memref<32x32xbf16, #tpu.memory_space<vmem>>, vector<16x8xbf16>,
    %51 = vector.extract_strided_slice %41 {offsets = [3, 0, 0], sizes = [1, 16, 8], strides = [1, 1, 1]} : vector<4x16x16xbf16> to vector<1x16x8xbf16>
    %52 = vector.shape_cast %51 : vector<1x16x8xbf16> to vector<16x8xbf16>
    %c0_36 = arith.constant 0 : index
    %c24 = arith.constant 24 : index
    %53 = vector.load %arg9[%c0_36, %c24] : memref<32x32xbf16, #tpu.memory_space<vmem>>, vector<16x8xbf16>
    tpu.vector_store %arg9[%c0_36, %c24], %52 {strides = array<i32>} : memref<32x32xbf16, #tpu.memory_space<vmem>>, vector<16x8xbf16>,
    %54 = vector.extract_strided_slice %41 {offsets = [0, 0, 8], sizes = [1, 16, 8], strides = [1, 1, 1]} : vector<4x16x16xbf16> to vector<1x16x8xbf16>
    %55 = vector.shape_cast %54 : vector<1x16x8xbf16> to vector<16x8xbf16>
    %c16_37 = arith.constant 16 : index
    %c0_38 = arith.constant 0 : index
    %56 = vector.load %arg9[%c16_37, %c0_38] : memref<32x32xbf16, #tpu.memory_space<vmem>>, vector<16x8xbf16>
    tpu.vector_store %arg9[%c16_37, %c0_38], %55 {strides = array<i32>} : memref<32x32xbf16, #tpu.memory_space<vmem>>, vector<16x8xbf16>,
    %57 = vector.extract_strided_slice %41 {offsets = [1, 0, 8], sizes = [1, 16, 8], strides = [1, 1, 1]} : vector<4x16x16xbf16> to vector<1x16x8xbf16>
    %58 = vector.shape_cast %57 : vector<1x16x8xbf16> to vector<16x8xbf16>
    %c16_39 = arith.constant 16 : index
    %c8_40 = arith.constant 8 : index
    %59 = vector.load %arg9[%c16_39, %c8_40] : memref<32x32xbf16, #tpu.memory_space<vmem>>, vector<16x8xbf16>
    tpu.vector_store %arg9[%c16_39, %c8_40], %58 {strides = array<i32>} : memref<32x32xbf16, #tpu.memory_space<vmem>>, vector<16x8xbf16>,
    %60 = vector.extract_strided_slice %41 {offsets = [2, 0, 8], sizes = [1, 16, 8], strides = [1, 1, 1]} : vector<4x16x16xbf16> to vector<1x16x8xbf16>
    %61 = vector.shape_cast %60 : vector<1x16x8xbf16> to vector<16x8xbf16>
    %c16_41 = arith.constant 16 : index
    %c16_42 = arith.constant 16 : index
    %62 = vector.load %arg9[%c16_41, %c16_42] : memref<32x32xbf16, #tpu.memory_space<vmem>>, vector<16x8xbf16>
    tpu.vector_store %arg9[%c16_41, %c16_42], %61 {strides = array<i32>} : memref<32x32xbf16, #tpu.memory_space<vmem>>, vector<16x8xbf16>,
    %63 = vector.extract_strided_slice %41 {offsets = [3, 0, 8], sizes = [1, 16, 8], strides = [1, 1, 1]} : vector<4x16x16xbf16> to vector<1x16x8xbf16>
    %64 = vector.shape_cast %63 : vector<1x16x8xbf16> to vector<16x8xbf16>
    %c16_43 = arith.constant 16 : index
    %c24_44 = arith.constant 24 : index
    %65 = vector.load %arg9[%c16_43, %c24_44] : memref<32x32xbf16, #tpu.memory_space<vmem>>, vector<16x8xbf16>
    tpu.vector_store %arg9[%c16_43, %c24_44], %64 {strides = array<i32>} : memref<32x32xbf16, #tpu.memory_space<vmem>>, vector<16x8xbf16>,
    %c0_45 = arith.constant 0 : index
    %c0_46 = arith.constant 0 : index
    %66 = vector.load %arg9[%c0_45, %c0_46] : memref<32x32xbf16, #tpu.memory_space<vmem>>, vector<32x32xbf16>
    %c0_47 = arith.constant 0 : index
    %c0_48 = arith.constant 0 : index
    %67 = vector.load %arg3[%c0_47, %c0_48] : memref<32x32xbf16, #tpu.memory_space<vmem>>, vector<32x32xbf16>
    %cst_49 = arith.constant dense<0.000000e+00> : vector<32x32xf32>
    %68 = tpu.matmul %66, %67, %cst_49 {dimension_numbers = #tpu.dot_dimension_numbers<[1], [0], [0], [1], [0, 0, 1, 1], [], []>} : vector<32x32xbf16>, vector<32x32xbf16>, vector<32x32xf32> -> vector<32x32xf32>
    %69 = arith.truncf %68 : vector<32x32xf32> to vector<32x32xbf16>
    %70 = vector.extract_strided_slice %69 {offsets = [0, 0], sizes = [16, 8], strides = [1, 1]} : vector<32x32xbf16> to vector<16x8xbf16>
    %c0_50 = arith.constant 0 : index
    %c0_51 = arith.constant 0 : index
    %c0_52 = arith.constant 0 : index
    %71 = vector.load %arg8[%c0_50, %c0_51, %c0_52] : memref<4x16x16xbf16, #tpu.memory_space<vmem>>, vector<1x16x8xbf16>
    %72 = vector.shape_cast %71 : vector<1x16x8xbf16> to vector<16x8xbf16>
    %73 = vector.shape_cast %70 : vector<16x8xbf16> to vector<1x16x8xbf16>
    tpu.vector_store %arg8[%c0_50, %c0_51, %c0_52], %73 {strides = array<i32>} : memref<4x16x16xbf16, #tpu.memory_space<vmem>>, vector<1x16x8xbf16>,
    %74 = vector.extract_strided_slice %69 {offsets = [0, 8], sizes = [16, 8], strides = [1, 1]} : vector<32x32xbf16> to vector<16x8xbf16>
    %c1_53 = arith.constant 1 : index
    %c0_54 = arith.constant 0 : index
    %c0_55 = arith.constant 0 : index
    %75 = vector.load %arg8[%c1_53, %c0_54, %c0_55] : memref<4x16x16xbf16, #tpu.memory_space<vmem>>, vector<1x16x8xbf16>
    %76 = vector.shape_cast %75 : vector<1x16x8xbf16> to vector<16x8xbf16>
    %77 = vector.shape_cast %74 : vector<16x8xbf16> to vector<1x16x8xbf16>
    tpu.vector_store %arg8[%c1_53, %c0_54, %c0_55], %77 {strides = array<i32>} : memref<4x16x16xbf16, #tpu.memory_space<vmem>>, vector<1x16x8xbf16>,
    %78 = vector.extract_strided_slice %69 {offsets = [0, 16], sizes = [16, 8], strides = [1, 1]} : vector<32x32xbf16> to vector<16x8xbf16>
    %c2_56 = arith.constant 2 : index
    %c0_57 = arith.constant 0 : index
    %c0_58 = arith.constant 0 : index
    %79 = vector.load %arg8[%c2_56, %c0_57, %c0_58] : memref<4x16x16xbf16, #tpu.memory_space<vmem>>, vector<1x16x8xbf16>
    %80 = vector.shape_cast %79 : vector<1x16x8xbf16> to vector<16x8xbf16>
    %81 = vector.shape_cast %78 : vector<16x8xbf16> to vector<1x16x8xbf16>
    tpu.vector_store %arg8[%c2_56, %c0_57, %c0_58], %81 {strides = array<i32>} : memref<4x16x16xbf16, #tpu.memory_space<vmem>>, vector<1x16x8xbf16>,
    %82 = vector.extract_strided_slice %69 {offsets = [0, 24], sizes = [16, 8], strides = [1, 1]} : vector<32x32xbf16> to vector<16x8xbf16>
    %c3_59 = arith.constant 3 : index
    %c0_60 = arith.constant 0 : index
    %c0_61 = arith.constant 0 : index
    %83 = vector.load %arg8[%c3_59, %c0_60, %c0_61] : memref<4x16x16xbf16, #tpu.memory_space<vmem>>, vector<1x16x8xbf16>
    %84 = vector.shape_cast %83 : vector<1x16x8xbf16> to vector<16x8xbf16>
    %85 = vector.shape_cast %82 : vector<16x8xbf16> to vector<1x16x8xbf16>
    tpu.vector_store %arg8[%c3_59, %c0_60, %c0_61], %85 {strides = array<i32>} : memref<4x16x16xbf16, #tpu.memory_space<vmem>>, vector<1x16x8xbf16>,
    %86 = vector.extract_strided_slice %69 {offsets = [16, 0], sizes = [16, 8], strides = [1, 1]} : vector<32x32xbf16> to vector<16x8xbf16>
    %c0_62 = arith.constant 0 : index
    %c0_63 = arith.constant 0 : index
    %c8_64 = arith.constant 8 : index
    %87 = vector.load %arg8[%c0_62, %c0_63, %c8_64] : memref<4x16x16xbf16, #tpu.memory_space<vmem>>, vector<1x16x8xbf16>
    %88 = vector.shape_cast %87 : vector<1x16x8xbf16> to vector<16x8xbf16>
    %89 = vector.shape_cast %86 : vector<16x8xbf16> to vector<1x16x8xbf16>
    tpu.vector_store %arg8[%c0_62, %c0_63, %c8_64], %89 {strides = array<i32>} : memref<4x16x16xbf16, #tpu.memory_space<vmem>>, vector<1x16x8xbf16>,
    %90 = vector.extract_strided_slice %69 {offsets = [16, 8], sizes = [16, 8], strides = [1, 1]} : vector<32x32xbf16> to vector<16x8xbf16>
    %c1_65 = arith.constant 1 : index
    %c0_66 = arith.constant 0 : index
    %c8_67 = arith.constant 8 : index
    %91 = vector.load %arg8[%c1_65, %c0_66, %c8_67] : memref<4x16x16xbf16, #tpu.memory_space<vmem>>, vector<1x16x8xbf16>
    %92 = vector.shape_cast %91 : vector<1x16x8xbf16> to vector<16x8xbf16>
    %93 = vector.shape_cast %90 : vector<16x8xbf16> to vector<1x16x8xbf16>
    tpu.vector_store %arg8[%c1_65, %c0_66, %c8_67], %93 {strides = array<i32>} : memref<4x16x16xbf16, #tpu.memory_space<vmem>>, vector<1x16x8xbf16>,
    %94 = vector.extract_strided_slice %69 {offsets = [16, 16], sizes = [16, 8], strides = [1, 1]} : vector<32x32xbf16> to vector<16x8xbf16>
    %c2_68 = arith.constant 2 : index
    %c0_69 = arith.constant 0 : index
    %c8_70 = arith.constant 8 : index
    %95 = vector.load %arg8[%c2_68, %c0_69, %c8_70] : memref<4x16x16xbf16, #tpu.memory_space<vmem>>, vector<1x16x8xbf16>
    %96 = vector.shape_cast %95 : vector<1x16x8xbf16> to vector<16x8xbf16>
    %97 = vector.shape_cast %94 : vector<16x8xbf16> to vector<1x16x8xbf16>
    tpu.vector_store %arg8[%c2_68, %c0_69, %c8_70], %97 {strides = array<i32>} : memref<4x16x16xbf16, #tpu.memory_space<vmem>>, vector<1x16x8xbf16>,
    %98 = vector.extract_strided_slice %69 {offsets = [16, 24], sizes = [16, 8], strides = [1, 1]} : vector<32x32xbf16> to vector<16x8xbf16>
    %c3_71 = arith.constant 3 : index
    %c0_72 = arith.constant 0 : index
    %c8_73 = arith.constant 8 : index
    %99 = vector.load %arg8[%c3_71, %c0_72, %c8_73] : memref<4x16x16xbf16, #tpu.memory_space<vmem>>, vector<1x16x8xbf16>
    %100 = vector.shape_cast %99 : vector<1x16x8xbf16> to vector<16x8xbf16>
    %101 = vector.shape_cast %98 : vector<16x8xbf16> to vector<1x16x8xbf16>
    tpu.vector_store %arg8[%c3_71, %c0_72, %c8_73], %101 {strides = array<i32>} : memref<4x16x16xbf16, #tpu.memory_space<vmem>>, vector<1x16x8xbf16>,
    %c0_74 = arith.constant 0 : index
    %c0_75 = arith.constant 0 : index
    %c0_76 = arith.constant 0 : index
    %102 = vector.load %arg5[%c0_74, %c0_75, %c0_76] : memref<4x16x16xbf16, #tpu.memory_space<vmem>>, vector<4x16x16xbf16>
    %c0_77 = arith.constant 0 : index
    %c0_78 = arith.constant 0 : index
    %c0_79 = arith.constant 0 : index
    %103 = vector.load %arg8[%c0_77, %c0_78, %c0_79] : memref<4x16x16xbf16, #tpu.memory_space<vmem>>, vector<4x16x16xbf16>
    "tpu.trace_start"() <{level = 10 : i32, message = "hlk,hkn->hln"}> : () -> ()
    %cst_80 = arith.constant dense<0.000000e+00> : vector<4x16x16xf32>
    %104 = tpu.matmul %102, %103, %cst_80 {dimension_numbers = #tpu.dot_dimension_numbers<[2], [1], [1], [2], [0, 0, 0, 1, 1, 2], [0], [0]>} : vector<4x16x16xbf16>, vector<4x16x16xbf16>, vector<4x16x16xf32> -> vector<4x16x16xf32>
    "tpu.trace_stop"() : () -> ()
    %105 = arith.truncf %104 : vector<4x16x16xf32> to vector<4x16x16xbf16>
    %106 = vector.extract_strided_slice %105 {offsets = [0, 0, 0], sizes = [1, 16, 8], strides = [1, 1, 1]} : vector<4x16x16xbf16> to vector<1x16x8xbf16>
    %107 = vector.shape_cast %106 : vector<1x16x8xbf16> to vector<16x8xbf16>
    %c0_81 = arith.constant 0 : index
    %c0_82 = arith.constant 0 : index
    %108 = vector.load %arg9[%c0_81, %c0_82] : memref<32x32xbf16, #tpu.memory_space<vmem>>, vector<16x8xbf16>
    tpu.vector_store %arg9[%c0_81, %c0_82], %107 {strides = array<i32>} : memref<32x32xbf16, #tpu.memory_space<vmem>>, vector<16x8xbf16>,
    %109 = vector.extract_strided_slice %105 {offsets = [1, 0, 0], sizes = [1, 16, 8], strides = [1, 1, 1]} : vector<4x16x16xbf16> to vector<1x16x8xbf16>
    %110 = vector.shape_cast %109 : vector<1x16x8xbf16> to vector<16x8xbf16>
    %c0_83 = arith.constant 0 : index
    %c8_84 = arith.constant 8 : index
    %111 = vector.load %arg9[%c0_83, %c8_84] : memref<32x32xbf16, #tpu.memory_space<vmem>>, vector<16x8xbf16>
    tpu.vector_store %arg9[%c0_83, %c8_84], %110 {strides = array<i32>} : memref<32x32xbf16, #tpu.memory_space<vmem>>, vector<16x8xbf16>,
    %112 = vector.extract_strided_slice %105 {offsets = [2, 0, 0], sizes = [1, 16, 8], strides = [1, 1, 1]} : vector<4x16x16xbf16> to vector<1x16x8xbf16>
    %113 = vector.shape_cast %112 : vector<1x16x8xbf16> to vector<16x8xbf16>
    %c0_85 = arith.constant 0 : index
    %c16_86 = arith.constant 16 : index
    %114 = vector.load %arg9[%c0_85, %c16_86] : memref<32x32xbf16, #tpu.memory_space<vmem>>, vector<16x8xbf16>
    tpu.vector_store %arg9[%c0_85, %c16_86], %113 {strides = array<i32>} : memref<32x32xbf16, #tpu.memory_space<vmem>>, vector<16x8xbf16>,
    %115 = vector.extract_strided_slice %105 {offsets = [3, 0, 0], sizes = [1, 16, 8], strides = [1, 1, 1]} : vector<4x16x16xbf16> to vector<1x16x8xbf16>
    %116 = vector.shape_cast %115 : vector<1x16x8xbf16> to vector<16x8xbf16>
    %c0_87 = arith.constant 0 : index
    %c24_88 = arith.constant 24 : index
    %117 = vector.load %arg9[%c0_87, %c24_88] : memref<32x32xbf16, #tpu.memory_space<vmem>>, vector<16x8xbf16>
    tpu.vector_store %arg9[%c0_87, %c24_88], %116 {strides = array<i32>} : memref<32x32xbf16, #tpu.memory_space<vmem>>, vector<16x8xbf16>,
    %118 = vector.extract_strided_slice %105 {offsets = [0, 0, 8], sizes = [1, 16, 8], strides = [1, 1, 1]} : vector<4x16x16xbf16> to vector<1x16x8xbf16>
    %119 = vector.shape_cast %118 : vector<1x16x8xbf16> to vector<16x8xbf16>
    %c16_89 = arith.constant 16 : index
    %c0_90 = arith.constant 0 : index
    %120 = vector.load %arg9[%c16_89, %c0_90] : memref<32x32xbf16, #tpu.memory_space<vmem>>, vector<16x8xbf16>
    tpu.vector_store %arg9[%c16_89, %c0_90], %119 {strides = array<i32>} : memref<32x32xbf16, #tpu.memory_space<vmem>>, vector<16x8xbf16>,
    %121 = vector.extract_strided_slice %105 {offsets = [1, 0, 8], sizes = [1, 16, 8], strides = [1, 1, 1]} : vector<4x16x16xbf16> to vector<1x16x8xbf16>
    %122 = vector.shape_cast %121 : vector<1x16x8xbf16> to vector<16x8xbf16>
    %c16_91 = arith.constant 16 : index
    %c8_92 = arith.constant 8 : index
    %123 = vector.load %arg9[%c16_91, %c8_92] : memref<32x32xbf16, #tpu.memory_space<vmem>>, vector<16x8xbf16>
    tpu.vector_store %arg9[%c16_91, %c8_92], %122 {strides = array<i32>} : memref<32x32xbf16, #tpu.memory_space<vmem>>, vector<16x8xbf16>,
    %124 = vector.extract_strided_slice %105 {offsets = [2, 0, 8], sizes = [1, 16, 8], strides = [1, 1, 1]} : vector<4x16x16xbf16> to vector<1x16x8xbf16>
    %125 = vector.shape_cast %124 : vector<1x16x8xbf16> to vector<16x8xbf16>
    %c16_93 = arith.constant 16 : index
    %c16_94 = arith.constant 16 : index
    %126 = vector.load %arg9[%c16_93, %c16_94] : memref<32x32xbf16, #tpu.memory_space<vmem>>, vector<16x8xbf16>
    tpu.vector_store %arg9[%c16_93, %c16_94], %125 {strides = array<i32>} : memref<32x32xbf16, #tpu.memory_space<vmem>>, vector<16x8xbf16>,
    %127 = vector.extract_strided_slice %105 {offsets = [3, 0, 8], sizes = [1, 16, 8], strides = [1, 1, 1]} : vector<4x16x16xbf16> to vector<1x16x8xbf16>
    %128 = vector.shape_cast %127 : vector<1x16x8xbf16> to vector<16x8xbf16>
    %c16_95 = arith.constant 16 : index
    %c24_96 = arith.constant 24 : index
    %129 = vector.load %arg9[%c16_95, %c24_96] : memref<32x32xbf16, #tpu.memory_space<vmem>>, vector<16x8xbf16>
    tpu.vector_store %arg9[%c16_95, %c24_96], %128 {strides = array<i32>} : memref<32x32xbf16, #tpu.memory_space<vmem>>, vector<16x8xbf16>,
    %c0_97 = arith.constant 0 : index
    %c0_98 = arith.constant 0 : index
    %130 = vector.load %arg9[%c0_97, %c0_98] : memref<32x32xbf16, #tpu.memory_space<vmem>>, vector<32x32xbf16>
    %c0_99 = arith.constant 0 : index
    %c0_100 = arith.constant 0 : index
    %131 = vector.load %arg6[%c0_99, %c0_100] : memref<32x32xbf16, #tpu.memory_space<vmem>>, vector<32x32xbf16>
    %cst_101 = arith.constant dense<0.000000e+00> : vector<32x32xf32>
    %132 = tpu.matmul %130, %131, %cst_101 {dimension_numbers = #tpu.dot_dimension_numbers<[1], [0], [0], [1], [0, 0, 1, 1], [], []>} : vector<32x32xbf16>, vector<32x32xbf16>, vector<32x32xf32> -> vector<32x32xf32>
    %c0_102 = arith.constant 0 : index
    %c0_103 = arith.constant 0 : index
    %133 = vector.load %arg7[%c0_102, %c0_103] : memref<32x32xf32, #tpu.memory_space<vmem>>, vector<32x32xf32>
    tpu.vector_store %arg7[%c0_102, %c0_103], %132 {strides = array<i32>} : memref<32x32xf32, #tpu.memory_space<vmem>>, vector<32x32xf32>,
    return
  }
  func.func @transform_0(%arg0: i32) -> (i32, i32) {
    %c0_i32 = arith.constant 0 : i32
    %c0_i32_0 = arith.constant 0 : i32
    return %arg0, %c0_i32 : i32, i32
  }
  func.func @transform_1(%arg0: i32) -> (i32, i32) {
    %c0_i32 = arith.constant 0 : i32
    %c0_i32_0 = arith.constant 0 : i32
    %c0_i32_1 = arith.constant 0 : i32
    return %c0_i32, %c0_i32_0 : i32, i32
  }
  func.func @transform_2(%arg0: i32) -> (i32, i32) {
    %c0_i32 = arith.constant 0 : i32
    %c0_i32_0 = arith.constant 0 : i32
    %c0_i32_1 = arith.constant 0 : i32
    return %c0_i32, %c0_i32_0 : i32, i32
  }
  func.func @transform_3(%arg0: i32) -> (i32, i32, i32) {
    %c0_i32 = arith.constant 0 : i32
    %c0_i32_0 = arith.constant 0 : i32
    %c0_i32_1 = arith.constant 0 : i32
    %c0_i32_2 = arith.constant 0 : i32
    return %c0_i32, %c0_i32_0, %c0_i32_1 : i32, i32, i32
  }
  func.func @transform_4(%arg0: i32) -> (i32, i32, i32) {
    %c0_i32 = arith.constant 0 : i32
    %c0_i32_0 = arith.constant 0 : i32
    %c0_i32_1 = arith.constant 0 : i32
    %c0_i32_2 = arith.constant 0 : i32
    return %c0_i32, %c0_i32_0, %c0_i32_1 : i32, i32, i32
  }
  func.func @transform_5(%arg0: i32) -> (i32, i32) {
    %c0_i32 = arith.constant 0 : i32
    %c0_i32_0 = arith.constant 0 : i32
    %c0_i32_1 = arith.constant 0 : i32
    return %c0_i32, %c0_i32_0 : i32, i32
  }
  func.func @transform_6(%arg0: i32) -> (i32, i32) {
    %c0_i32 = arith.constant 0 : i32
    %c0_i32_0 = arith.constant 0 : i32
    return %arg0, %c0_i32 : i32, i32
  }
}

</mosaic_0001>

<bundles_post_ra>
// kernel: tpu_custom_call.1
= control target key start
LH: loop header
LB: loop body
LE: loop exit
PB: predicated region body
PF: predicated region fallthrough
CT: control target
= control target key end

     0   :  { %11 = vsyncpa [#allocation5], 0  ;;  %s1804_s0 = inlined_call_operand.hbm [shape: bf16[32,32], index: 0, kind: input, shape index: {}]   ;;  %s1805_s1 = inlined_call_operand.hbm [shape: bf16[32,32], index: 1, kind: input, shape index: {}]   ;;  %s1806_s2 = inlined_call_operand.hbm [shape: bf16[32,32], index: 2, kind: input, shape index: {}]   ;;  %s1807_s3 = inlined_call_operand.hbm [shape: bf16[4,16,16], index: 3, kind: input, shape index: {}]   ;;  %s1808_s4 = inlined_call_operand.hbm [shape: bf16[4,16,16], index: 4, kind: input, shape index: {}]   ;;  %s1809_s5 = inlined_call_operand.hbm [shape: bf16[32,32], index: 5, kind: input, shape index: {}]   ;;  %s1810_s6 = inlined_call_operand.hbm [shape: f32[32,32], index: 6, kind: output, shape index: {}]  }
   0x1   :  { %12 = vsyncpa [#allocation8], 0 }
   0x2   :  { %13 = vsyncpa [#allocation11], 0 }
   0x3   :  { %14 = vsyncpa [#allocation14], 0 }
   0x4   :  { %15 = vsyncpa [#allocation6], 0  ;;  %s1557_s21 = smov [#allocation7]   ;;  %s1558_s23 = smov [#allocation10]  }
   0x5   :  { %s33_s22 = sshll.u32 %s1557_s21, 4  ;;  %s57_s24 = sshll.u32 %s1558_s23, 4  ;;  %s34_s22 = int_to_ptr.vmem [resolvable:$true] %s33_s22  ;;  %s58_s24 = int_to_ptr.vmem [resolvable:$true] %s57_s24 }
   0x6   :  { %s1415_s25 = scalar_lea.vmem %s34_s22, 256  ;;  %p1420_p1 = scmp.lt.s32.totalorder %s34_s22, %s34_s22 }
   0x7   :  { %p1416_p0 = scmp.ne.s32.totalorder %s34_s22, %s1415_s25  ;;  %p1421_p2 = scmp.lt.s32.totalorder %s1415_s25, %s1415_s25 }
   0x9   :  { %p1422_p3 = por %p1421_p2, %p1420_p1 }
   0xb   :  { %p1423_p4 = pnand %p1422_p3, %p1416_p0 }
   0xd   :  { %1426 = shalt.err (!%p1423_p4)
}
   0xe   :  { %s1559_s26 = smov 64   ;;  %s1560_s27 = smov 4  }
   0xf   :  { %39 = dma.hbm_to_vmem [thread:$0]  %s1805_s1, 256, %s34_s22, [#allocation8], %s1559_s26, %s1559_s26, %s1560_s27  }
  0x10   :  { %s1435_s30 = scalar_lea.vmem %s58_s24, 512  ;;  %p1440_p6 = scmp.lt.s32.totalorder %s58_s24, %s58_s24 }
  0x11   :  { %p1436_p5 = scmp.ne.s32.totalorder %s58_s24, %s1435_s30  ;;  %p1441_p7 = scmp.lt.s32.totalorder %s1435_s30, %s1435_s30 }
  0x13   :  { %p1442_p8 = por %p1441_p7, %p1440_p6 }
  0x15   :  { %p1443_p9 = pnand %p1442_p8, %p1436_p5 }
  0x17   :  { %1446 = shalt.err (!%p1443_p9)
}
  0x18   :  { %63 = dma.hbm_to_vmem [thread:$0]  %s1807_s3, 512, %s58_s24, [#allocation11], %s1559_s26, %s1559_s26, %s1560_s27  }
  0x19   :  { %s1561_s9 = smov [#allocation4]   ;;  %s1562_s11 = smov [#allocation9]  }
  0x1a   :  { %s21_s10 = sshll.u32 %s1561_s9, 4  ;;  %s45_s12 = sshll.u32 %s1562_s11, 4  ;;  %s22_s10 = int_to_ptr.vmem [resolvable:$true] %s21_s10  ;;  %s46_s12 = int_to_ptr.vmem [resolvable:$true] %s45_s12 }
  0x1b   :  { %s1455_s1 = scalar_lea.vmem %s22_s10, 256  ;;  %p1460_p11 = scmp.lt.s32.totalorder %s22_s10, %s22_s10 }
  0x1c   :  { %p1456_p10 = scmp.ne.s32.totalorder %s22_s10, %s1455_s1  ;;  %p1461_p12 = scmp.lt.s32.totalorder %s1455_s1, %s1455_s1 }
  0x1e   :  { %p1462_p13 = por %p1461_p12, %p1460_p11 }
  0x20   :  { %p1463_p0 = pnand %p1462_p13, %p1456_p10 }
  0x22   :  { %1466 = shalt.err (!%p1463_p0)
}
  0x23   :  { %27 = dma.hbm_to_vmem [thread:$0]  %s1804_s0, 256, %s22_s10, [#allocation5], %s1559_s26, %s1559_s26, %s1560_s27  }
  0x24   :  { %s1475_s3 = scalar_lea.vmem %s46_s12, 256  ;;  %p1480_p2 = scmp.lt.s32.totalorder %s46_s12, %s46_s12 }
  0x25   :  { %p1476_p1 = scmp.ne.s32.totalorder %s46_s12, %s1475_s3  ;;  %p1481_p3 = scmp.lt.s32.totalorder %s1475_s3, %s1475_s3 }
  0x27   :  { %p1482_p4 = por %p1481_p3, %p1480_p2 }
  0x29   :  { %p1483_p5 = pnand %p1482_p4, %p1476_p1 }
  0x2b   :  { %1486 = shalt.err (!%p1483_p5)
}
  0x2c   :  { %51 = dma.hbm_to_vmem [thread:$0]  %s1806_s2, 256, %s46_s12, [#allocation8], %s1559_s26, %s1559_s26, %s1560_s27  }
  0x2d   :  { %s1563_s17 = smov [#allocation12]   ;;  %s1564_s19 = smov [#allocation13]  }
  0x2e   :  { %s69_s18 = sshll.u32 %s1563_s17, 4  ;;  %s81_s20 = sshll.u32 %s1564_s19, 4  ;;  %s70_s18 = int_to_ptr.vmem [resolvable:$true] %s69_s18  ;;  %s82_s20 = int_to_ptr.vmem [resolvable:$true] %s81_s20 }
  0x2f   :  { %s1495_s0 = scalar_lea.vmem %s70_s18, 512  ;;  %p1500_p7 = scmp.lt.s32.totalorder %s70_s18, %s70_s18 }
  0x30   :  { %p1496_p6 = scmp.ne.s32.totalorder %s70_s18, %s1495_s0  ;;  %p1501_p8 = scmp.lt.s32.totalorder %s1495_s0, %s1495_s0 }
  0x32   :  { %p1502_p9 = por %p1501_p8, %p1500_p7 }
  0x34   :  { %p1503_p10 = pnand %p1502_p9, %p1496_p6 }
  0x36   :  { %1506 = shalt.err (!%p1503_p10)
}
  0x37   :  { %75 = dma.hbm_to_vmem [thread:$0]  %s1808_s4, 512, %s70_s18, [#allocation11], %s1559_s26, %s1559_s26, %s1560_s27  }
  0x38   :  { %s1515_s2 = scalar_lea.vmem %s82_s20, 256  ;;  %p1520_p12 = scmp.lt.s32.totalorder %s82_s20, %s82_s20 }
  0x39   :  { %p1516_p11 = scmp.ne.s32.totalorder %s82_s20, %s1515_s2  ;;  %p1521_p13 = scmp.lt.s32.totalorder %s1515_s2, %s1515_s2 }
  0x3b   :  { %p1522_p0 = por %p1521_p13, %p1520_p12 }
  0x3d   :  { %p1523_p1 = pnand %p1522_p0, %p1516_p11 }
  0x3f   :  { %1526 = shalt.err (!%p1523_p1)
}
  0x40   :  { %87 = dma.hbm_to_vmem [thread:$0]  %s1809_s5, 256, %s82_s20, [#allocation14], %s1559_s26, %s1559_s26, %s1560_s27  }
  0x41   :  { %1547 = dma.done.wait [#allocation5], 256  }
  0x42   :  { %1548 = vsyncadd [#allocation5], 4294967040 }
  0x43   :  { %1549 = dma.done.wait [#allocation8], 512  }
  0x44   :  { %1550 = vsyncadd [#allocation8], 4294966784 }
  0x45   :  { %1551 = dma.done.wait [#allocation11], 1024  }
  0x46   :  { %1552 = vsyncadd [#allocation11], 4294966272 }
  0x47   :  { %1553 = dma.done.wait [#allocation14], 256  }
  0x48   :  { %1554 = vsyncadd [#allocation14], 4294967040  ;;  %v1379_v0 = vld [vmem:[#allocation7 + $0x8] sm:$0xff]   ;;  %v1380_v1 = vld [vmem:[#allocation7] sm:$0xff]   ;;  %vm137_vm0 = vcmask 261120   ;;  %vm202_vm1 = vcmask 60416  }
  0x49   :  { %1289 = vmatprep.subr.bf16.mxu0 %v1379_v0  ;;  %v1381_v2 = vld [vmem:[#allocation4] sm:$0xff]   ;;  %v1382_v3 = vld [vmem:[#allocation4 + $0x8] sm:$0xff]   ;;  %v1565_v7 = vmov 0.0   ;;  %s1566_s4 = smov 8   ;;  %s1567_s5 = smov 120   ;;  %vm1568_vm2 = vmmov 0  }
  0x4a   :  { %1290 = vmatpush3.bf16.msra.mxu0 %v1379_v0  ;;  %1293 = vmatprep.mubr.msk.bf16.mxu0 %vm137_vm0, %v1381_v2  ;;  %s1569_s25 = smov 112   ;;  %s1570_s26 = smov 104   ;;  %vm243_vm3 = vcmask 126016   ;;  %v1384_v21 = vld [vmem:[#allocation10] sm:$0xff]   ;;  %vm293_vm4 = vcmask 130048   ;;  %v1387_v27 = vld [vmem:[#allocation10 + $0x8] sm:$0xff]  }
  0x4b   :  { %1291 = vmatprep.subr.bf16.mxu0 %v1380_v1  ;;  %1297 = vmatprep.subr.bf16.mxu1 %v1565_v7  ;;  %v1388_v30 = vld [vmem:[#allocation10 + $0x10] sm:$0xff]   ;;  %v1390_v32 = vld [vmem:[#allocation10 + $0x18] sm:$0xff]   ;;  %s1571_s27 = smov 16   ;;  %s1572_s28 = smov 24   ;;  %vm548_vm5 = vcmask 191616   ;;  %vm562_vm6 = vcmask 257216  }
  0x4c   :  { %1299 = vmatprep.mubr.msk.bf16.mxu1 %vm1568_vm2, %v1565_v7  ;;  %v1391_v60 = vld [vmem:[#allocation9 + $0x8] sm:$0xff]   ;;  %v1392_v62 = vld [vmem:[#allocation9] sm:$0xff]   ;;  %s1573_s29 = smov [#allocation15]  }
  0x4d   :  { %s1156_s30 = sshll.u32 %s1573_s29, 4  ;;  %s1157_s30 = int_to_ptr.vmem [resolvable:$true] %s1156_s30 }
  0x4e   :  { %1292 = vmatpush3.bf16.msra.mxu0 %v1380_v1  ;;  %s1527_s7 = scalar_lea.vmem %s1157_s30, 512  ;;  %p1532_p3 = scmp.lt.s32.totalorder %s1157_s30, %s1157_s30 }
  0x4f   :  { %1309 = vmatprep.subr.bf16.mxu0 %v1565_v7  ;;  %p1528_p2 = scmp.ne.s32.totalorder %s1157_s30, %s1527_s7  ;;  %p1533_p4 = scmp.lt.s32.totalorder %s1527_s7, %s1527_s7 }
  0x51   :  { %1294 = vmatmul.mubr.msk.bf16.vlgmr.msra.gmra.mxu0 %vm137_vm0, %v1382_v3  ;;  %p1534_p5 = por %p1533_p4, %p1532_p3 }
  0x52   :  { %1311 = vmatprep.mubr.msk.bf16.mxu0 %vm1568_vm2, %v1565_v7 }
  0x53   :  { %p1535_p6 = pnand %p1534_p5, %p1528_p2 }
 0x111   :  { %v1295_v4 = vpop.f32.mrf.mxu0 }
 0x112   :  { %v1239_v5 = vpack.c.bf16 %v1295_v4, %v1295_v4 }
 0x113   :  { %v178_v6 = vpop.f32.mrf.mxu0 }
 0x114   :  { %v1237_v8 = vpack.c.bf16 %v178_v6, %v178_v6  ;;  %237 = vrot.lane.b32.xlu0 %v1239_v5, %s1566_s4 }
 0x115   :  { %v1296_v9 = vpop.f32.mrf.mxu0 }
 0x116   :  { %v1240_v10 = vpack.c.bf16 %v1296_v9, %v1296_v9  ;;  %205 = vrot.lane.b32.xlu1 %v1237_v8, %s1567_s5  ;;  %203 = vst.msk [vmem:[#allocation2] sm:$0xf] %vm202_vm1, %v1237_v8 }
 0x117   :  { %v181_v11 = vpop.f32.mrf.mxu0 }
 0x118   :  { %v1238_v12 = vpack.c.bf16 %v181_v11, %v181_v11  ;;  %239 = vrot.lane.b32.xlu0 %v1240_v10, %s1566_s4 }
 0x11a   :  { %252 = vrot.lane.b32.xlu1 %v1240_v10, %s1567_s5  ;;  %204 = vst.msk [vmem:[#allocation2 + $0x4] sm:$0xf] %vm202_vm1, %v1238_v12 }
 0x11c   :  { %214 = vrot.lane.b32.xlu0 %v1237_v8, %s1569_s25 }
 0x11e   :  { %207 = vrot.lane.b32.xlu1 %v1238_v12, %s1567_s5 }
 0x120   :  { %223 = vrot.lane.b32.xlu0 %v1237_v8, %s1570_s26 }
 0x122   :  { %216 = vrot.lane.b32.xlu1 %v1238_v12, %s1569_s25 }
 0x124   :  { %250 = vrot.lane.b32.xlu0 %v1239_v5, %s1567_s5 }
 0x126   :  { %225 = vrot.lane.b32.xlu1 %v1238_v12, %s1570_s26 }
 0x128   :  { %258 = vrot.lane.b32.xlu0 %v1239_v5, %s1569_s25 }
 0x12a   :  { %260 = vrot.lane.b32.xlu1 %v1240_v10, %s1569_s25 }
 0x186   :  { %v238_v13 = vpop.permute.xlu0 %237 }
 0x187   :  { %244 = vst.msk [vmem:[#allocation2] sm:$0xf] %vm243_vm3, %v238_v13 }
 0x188   :  { %v206_v14 = vpop.permute.xlu1 %205 }
 0x189   :  { %212 = vst.msk [vmem:[#allocation2 + $0x8] sm:$0xf] %vm202_vm1, %v206_v14 }
 0x18a   :  { %248 = vst.msk [vmem:[#allocation2 + $0x8] sm:$0xf] %vm243_vm3, %v1239_v5  ;;  %v240_v15 = vpop.permute.xlu0 %239 }
 0x18b   :  { %245 = vst.msk [vmem:[#allocation2 + $0x4] sm:$0xf] %vm243_vm3, %v240_v15 }
 0x18c   :  { %v253_v16 = vpop.permute.xlu1 %252 }
 0x18e   :  { %v215_v17 = vpop.permute.xlu0 %214 }
 0x18f   :  { %221 = vst.msk [vmem:[#allocation2 + $0x10] sm:$0xf] %vm202_vm1, %v215_v17 }
 0x190   :  { %v208_v18 = vpop.permute.xlu1 %207 }
 0x191   :  { %213 = vst.msk [vmem:[#allocation2 + $0xc] sm:$0xf] %vm202_vm1, %v208_v18 }
 0x192   :  { %249 = vst.msk [vmem:[#allocation2 + $0xc] sm:$0xf] %vm243_vm3, %v1240_v10  ;;  %v224_v19 = vpop.permute.xlu0 %223  ;;  %v1383_v20 = vld [vmem:[#allocation2] sm:$0xff]  }
 0x193   :  { %230 = vst.msk [vmem:[#allocation2 + $0x18] sm:$0xf] %vm202_vm1, %v224_v19  ;;  %1298 = vmatpush3.bf16.msra.mxu1 %v1383_v20 }
 0x194   :  { %v217_v22 = vpop.permute.xlu1 %216  ;;  %1303 = vmatprep.subr.bf16.mxu1 %v1565_v7 }
 0x195   :  { %222 = vst.msk [vmem:[#allocation2 + $0x14] sm:$0xf] %vm202_vm1, %v217_v22 }
 0x196   :  { %257 = vst.msk [vmem:[#allocation2 + $0x14] sm:$0xf] %vm243_vm3, %v253_v16  ;;  %v251_v23 = vpop.permute.xlu0 %250  ;;  %1300 = vmatmul.mubr.msk.bf16.vlgmr.msra.gmra.mxu1 %vm293_vm4, %v1384_v21 }
 0x197   :  { %256 = vst.msk [vmem:[#allocation2 + $0x10] sm:$0xf] %vm243_vm3, %v251_v23  ;;  %1305 = vmatprep.mubr.msk.bf16.mxu1 %vm1568_vm2, %v1565_v7 }
 0x198   :  { %v226_v24 = vpop.permute.xlu1 %225 }
 0x199   :  { %231 = vst.msk [vmem:[#allocation2 + $0x1c] sm:$0xf] %vm202_vm1, %v226_v24  ;;  %v1385_v25 = vld [vmem:[#allocation2 + $0x8] sm:$0xff]  }
 0x19a   :  { %v259_v26 = vpop.permute.xlu0 %258  ;;  %1304 = vmatpush3.bf16.msra.mxu1 %v1385_v25 }
 0x19b   :  { %264 = vst.msk [vmem:[#allocation2 + $0x18] sm:$0xf] %vm243_vm3, %v259_v26  ;;  %1315 = vmatprep.subr.bf16.mxu1 %v1565_v7 }
 0x19c   :  { %v261_v28 = vpop.permute.xlu1 %260 }
 0x19d   :  { %265 = vst.msk [vmem:[#allocation2 + $0x1c] sm:$0xf] %vm243_vm3, %v261_v28 }
 0x19e   :  { %v1386_v29 = vld [vmem:[#allocation2 + $0x10] sm:$0xff]   ;;  %1306 = vmatmul.mubr.msk.bf16.vlgmr.msra.gmra.mxu1 %vm293_vm4, %v1387_v27 }
 0x19f   :  { %1310 = vmatpush3.bf16.msra.mxu0 %v1386_v29  ;;  %1317 = vmatprep.mubr.msk.bf16.mxu1 %vm1568_vm2, %v1565_v7 }
 0x1a0   :  { %1321 = vmatprep.subr.bf16.mxu0 %v1391_v60 }
 0x1a2   :  { %1312 = vmatmul.mubr.msk.bf16.vlgmr.msra.gmra.mxu0 %vm293_vm4, %v1388_v30 }
 0x1a3   :  { %1322 = vmatpush3.bf16.msra.mxu0 %v1391_v60 }
 0x1a4   :  { %v1389_v31 = vld [vmem:[#allocation2 + $0x18] sm:$0xff]   ;;  %1323 = vmatprep.subr.bf16.mxu0 %v1392_v62 }
 0x1a5   :  { %1316 = vmatpush3.bf16.msra.mxu1 %v1389_v31 }
 0x1a6   :  { %1329 = vmatprep.subr.bf16.mxu1 %v1565_v7 }
 0x1a7   :  { %1324 = vmatpush3.bf16.msra.mxu0 %v1392_v62  ;;  %v1403_v62 = vld [vmem:[#allocation13 + $0x8] sm:$0xff]  }
 0x1a8   :  { %1318 = vmatmul.mubr.msk.bf16.vlgmr.msra.gmra.mxu1 %vm293_vm4, %v1390_v32  ;;  %1335 = vmatprep.subr.bf16.mxu0 %v1565_v7 }
 0x1a9   :  { %1331 = vmatprep.mubr.msk.bf16.mxu1 %vm1568_vm2, %v1565_v7 }
 0x256   :  { %v331_v33 = vpop.f32.mrf.mxu1 }
 0x257   :  { %v503_v34 = vmax.f32 %v331_v33, 0.0 }
 0x258   :  { %v1301_v35 = vpop.f32.mrf.mxu1 }
 0x259   :  { %v1241_v36 = vpack.c.bf16 %v503_v34, %v503_v34  ;;  %v1396_v34 = vld [vmem:[#allocation12] sm:$0xff]  }
 0x25a   :  { %v334_v37 = vpop.f32.mrf.mxu1 }
 0x25b   :  { %522 = vst.msk [vmem:[#allocation3] sm:$0xf] %vm202_vm1, %v1241_v36  ;;  %v504_v38 = vmax.f32 %v334_v37, 0.0  ;;  %565 = vrot.lane.b32.xlu0 %v1241_v36, %s1567_s5 }
 0x25c   :  { %v1302_v39 = vpop.f32.mrf.mxu1 }
 0x25d   :  { %v1242_v40 = vpack.c.bf16 %v504_v38, %v504_v38 }
 0x25e   :  { %v386_v41 = vpop.f32.mrf.mxu1 }
 0x25f   :  { %523 = vst.msk [vmem:[#allocation3 + $0x4] sm:$0xf] %vm202_vm1, %v1242_v40  ;;  %567 = vrot.lane.b32.xlu1 %v1242_v40, %s1567_s5  ;;  %v505_v53 = vmax.f32 %v386_v41, 0.0  ;;  %v1398_v40 = vld [vmem:[#allocation12 + $0x8] sm:$0xff]  }
 0x260   :  { %v1307_v42 = vpop.f32.mrf.mxu1 }
 0x261   :  { %v1243_v58 = vpack.c.bf16 %v505_v53, %v505_v53 }
 0x262   :  { %v441_v43 = vpop.f32.mrf.mxu0  ;;  %v389_v44 = vpop.f32.mrf.mxu1 }
 0x263   :  { %v507_v45 = vmax.f32 %v441_v43, 0.0  ;;  %v506_v59 = vmax.f32 %v389_v44, 0.0  ;;  %v1400_v43 = vld [vmem:[#allocation12 + $0x10] sm:$0xff]  }
 0x264   :  { %v1313_v46 = vpop.f32.mrf.mxu0  ;;  %v1308_v47 = vpop.f32.mrf.mxu1 }
 0x265   :  { %v1245_v48 = vpack.c.bf16 %v507_v45, %v507_v45  ;;  %v1244_v0 = vpack.c.bf16 %v506_v59, %v506_v59  ;;  %v1402_v45 = vld [vmem:[#allocation12 + $0x18] sm:$0xff]  }
 0x266   :  { %v444_v49 = vpop.f32.mrf.mxu0 }
 0x267   :  { %v508_v50 = vmax.f32 %v444_v49, 0.0  ;;  %542 = vrot.lane.b32.xlu0 %v1245_v48, %s1571_s27 }
 0x268   :  { %v1314_v51 = vpop.f32.mrf.mxu0  ;;  %v496_v52 = vpop.f32.mrf.mxu1 }
 0x269   :  { %v1246_v54 = vpack.c.bf16 %v508_v50, %v508_v50  ;;  %v509_v56 = vmax.f32 %v496_v52, 0.0 }
 0x26a   :  { %v1319_v55 = vpop.f32.mrf.mxu1 }
 0x26b   :  { %577 = vrot.lane.b32.xlu0 %v1245_v48, %s1566_s4  ;;  %544 = vrot.lane.b32.xlu1 %v1246_v54, %s1571_s27  ;;  %v1247_v63 = vpack.c.bf16 %v509_v56, %v509_v56 }
 0x26c   :  { %v499_v57 = vpop.f32.mrf.mxu1 }
 0x26d   :  { %v510_v1 = vmax.f32 %v499_v57, 0.0 }
 0x26e   :  { %v1320_v61 = vpop.f32.mrf.mxu1 }
 0x26f   :  { %579 = vrot.lane.b32.xlu1 %v1246_v54, %s1566_s4  ;;  %529 = vrot.lane.b32.xlu0 %v1243_v58, %s1566_s4  ;;  %v1248_v2 = vpack.c.bf16 %v510_v1, %v510_v1 }
 0x273   :  { %531 = vrot.lane.b32.xlu1 %v1244_v0, %s1566_s4  ;;  %556 = vrot.lane.b32.xlu0 %v1247_v63, %s1572_s28 }
 0x277   :  { %585 = vrot.lane.b32.xlu0 %v1247_v63, %s1571_s27  ;;  %558 = vrot.lane.b32.xlu1 %v1248_v2, %s1572_s28 }
 0x27b   :  { %587 = vrot.lane.b32.xlu1 %v1248_v2, %s1571_s27 }
 0x2cd   :  { %v566_v3 = vpop.permute.xlu0 %565 }
 0x2ce   :  { %571 = vst.msk [vmem:[#allocation3 + $0x8] sm:$0xf] %vm202_vm1, %v566_v3 }
 0x2cf   :  { %575 = vst.msk [vmem:[#allocation3 + $0x8] sm:$0xf] %vm243_vm3, %v1243_v58 }
 0x2d1   :  { %v568_v4 = vpop.permute.xlu1 %567 }
 0x2d2   :  { %572 = vst.msk [vmem:[#allocation3 + $0xc] sm:$0xf] %vm202_vm1, %v568_v4 }
 0x2d3   :  { %576 = vst.msk [vmem:[#allocation3 + $0xc] sm:$0xf] %vm243_vm3, %v1244_v0  ;;  %v1404_v0 = vld [vmem:[#allocation13] sm:$0xff]  }
 0x2d9   :  { %v543_v5 = vpop.permute.xlu0 %542 }
 0x2dd   :  { %v578_v6 = vpop.permute.xlu0 %577  ;;  %v545_v8 = vpop.permute.xlu1 %544 }
 0x2de   :  { %583 = vst.msk [vmem:[#allocation3 + $0x8] sm:$0xf] %vm548_vm5, %v578_v6 }
 0x2e1   :  { %v580_v9 = vpop.permute.xlu1 %579  ;;  %v530_v10 = vpop.permute.xlu0 %529 }
 0x2e2   :  { %584 = vst.msk [vmem:[#allocation3 + $0xc] sm:$0xf] %vm548_vm5, %v580_v9 }
 0x2e3   :  { %535 = vst.msk [vmem:[#allocation3] sm:$0xf] %vm243_vm3, %v530_v10 }
 0x2e4   :  { %549 = vst.msk [vmem:[#allocation3] sm:$0xf] %vm548_vm5, %v543_v5 }
 0x2e5   :  { %v532_v11 = vpop.permute.xlu1 %531  ;;  %v557_v12 = vpop.permute.xlu0 %556 }
 0x2e6   :  { %536 = vst.msk [vmem:[#allocation3 + $0x4] sm:$0xf] %vm243_vm3, %v532_v11 }
 0x2e7   :  { %563 = vst.msk [vmem:[#allocation3] sm:$0xf] %vm562_vm6, %v557_v12 }
 0x2e8   :  { %550 = vst.msk [vmem:[#allocation3 + $0x4] sm:$0xf] %vm548_vm5, %v545_v8 }
 0x2e9   :  { %v586_v13 = vpop.permute.xlu0 %585  ;;  %v559_v14 = vpop.permute.xlu1 %558 }
 0x2ea   :  { %591 = vst.msk [vmem:[#allocation3 + $0x8] sm:$0xf] %vm562_vm6, %v586_v13  ;;  %564 = vst.msk [vmem:[#allocation3 + $0x4] sm:$0xf] %vm562_vm6, %v559_v14 }
 0x2ed   :  { %v588_v15 = vpop.permute.xlu1 %587 }
 0x2ee   :  { %592 = vst.msk [vmem:[#allocation3 + $0xc] sm:$0xf] %vm562_vm6, %v588_v15 }
 0x2f1   :  { %v1393_v16 = vld [vmem:[#allocation3] sm:$0xff]  }
 0x2f2   :  { %1325 = vmatprep.mubr.msk.bf16.mxu0 %vm137_vm0, %v1393_v16 }
 0x2f5   :  { %v1394_v17 = vld [vmem:[#allocation3 + $0x8] sm:$0xff]  }
 0x2f6   :  { %1326 = vmatmul.mubr.msk.bf16.vlgmr.msra.gmra.mxu0 %vm137_vm0, %v1394_v17 }
 0x2f7   :  { %1337 = vmatprep.mubr.msk.bf16.mxu0 %vm1568_vm2, %v1565_v7 }
 0x3b6   :  { %v1327_v18 = vpop.f32.mrf.mxu0 }
 0x3b7   :  { %v1251_v19 = vpack.c.bf16 %v1327_v18, %v1327_v18 }
 0x3b8   :  { %v663_v20 = vpop.f32.mrf.mxu0 }
 0x3b9   :  { %v1249_v21 = vpack.c.bf16 %v663_v20, %v663_v20  ;;  %718 = vrot.lane.b32.xlu0 %v1251_v19, %s1566_s4 }
 0x3ba   :  { %v1328_v22 = vpop.f32.mrf.mxu0 }
 0x3bb   :  { %687 = vst.msk [vmem:[#allocation2] sm:$0xf] %vm202_vm1, %v1249_v21  ;;  %v1252_v23 = vpack.c.bf16 %v1328_v22, %v1328_v22 }
 0x3bc   :  { %v666_v24 = vpop.f32.mrf.mxu0 }
 0x3bd   :  { %v1250_v25 = vpack.c.bf16 %v666_v24, %v666_v24  ;;  %730 = vrot.lane.b32.xlu0 %v1251_v19, %s1567_s5  ;;  %720 = vrot.lane.b32.xlu1 %v1252_v23, %s1566_s4 }
 0x3bf   :  { %688 = vst.msk [vmem:[#allocation2 + $0x4] sm:$0xf] %vm202_vm1, %v1250_v25 }
 0x3c1   :  { %689 = vrot.lane.b32.xlu0 %v1249_v21, %s1567_s5  ;;  %732 = vrot.lane.b32.xlu1 %v1252_v23, %s1567_s5 }
 0x3c5   :  { %697 = vrot.lane.b32.xlu0 %v1249_v21, %s1569_s25  ;;  %691 = vrot.lane.b32.xlu1 %v1250_v25, %s1567_s5 }
 0x3c9   :  { %705 = vrot.lane.b32.xlu0 %v1249_v21, %s1570_s26  ;;  %699 = vrot.lane.b32.xlu1 %v1250_v25, %s1569_s25 }
 0x3cd   :  { %738 = vrot.lane.b32.xlu0 %v1251_v19, %s1569_s25  ;;  %707 = vrot.lane.b32.xlu1 %v1250_v25, %s1570_s26 }
 0x3d1   :  { %740 = vrot.lane.b32.xlu1 %v1252_v23, %s1569_s25 }
 0x42b   :  { %v719_v26 = vpop.permute.xlu0 %718 }
 0x42c   :  { %724 = vst.msk [vmem:[#allocation2] sm:$0xf] %vm243_vm3, %v719_v26 }
 0x42f   :  { %v731_v27 = vpop.permute.xlu0 %730  ;;  %v721_v28 = vpop.permute.xlu1 %720 }
 0x430   :  { %725 = vst.msk [vmem:[#allocation2 + $0x4] sm:$0xf] %vm243_vm3, %v721_v28 }
 0x433   :  { %v690_v29 = vpop.permute.xlu0 %689  ;;  %v733_v30 = vpop.permute.xlu1 %732 }
 0x434   :  { %695 = vst.msk [vmem:[#allocation2 + $0x8] sm:$0xf] %vm202_vm1, %v690_v29 }
 0x435   :  { %728 = vst.msk [vmem:[#allocation2 + $0x8] sm:$0xf] %vm243_vm3, %v1251_v19 }
 0x437   :  { %v698_v31 = vpop.permute.xlu0 %697  ;;  %v692_v32 = vpop.permute.xlu1 %691  ;;  %v1395_v33 = vld [vmem:[#allocation2] sm:$0xff]  }
 0x438   :  { %703 = vst.msk [vmem:[#allocation2 + $0x10] sm:$0xf] %vm202_vm1, %v698_v31  ;;  %696 = vst.msk [vmem:[#allocation2 + $0xc] sm:$0xf] %vm202_vm1, %v692_v32  ;;  %1330 = vmatpush3.bf16.msra.mxu1 %v1395_v33 }
 0x439   :  { %736 = vst.msk [vmem:[#allocation2 + $0x10] sm:$0xf] %vm243_vm3, %v731_v27  ;;  %729 = vst.msk [vmem:[#allocation2 + $0xc] sm:$0xf] %vm243_vm3, %v1252_v23  ;;  %1341 = vmatprep.subr.bf16.mxu1 %v1565_v7 }
 0x43b   :  { %v706_v35 = vpop.permute.xlu0 %705  ;;  %v700_v36 = vpop.permute.xlu1 %699  ;;  %1332 = vmatmul.mubr.msk.bf16.vlgmr.msra.gmra.mxu1 %vm293_vm4, %v1396_v34 }
 0x43c   :  { %711 = vst.msk [vmem:[#allocation2 + $0x18] sm:$0xf] %vm202_vm1, %v706_v35  ;;  %704 = vst.msk [vmem:[#allocation2 + $0x14] sm:$0xf] %vm202_vm1, %v700_v36  ;;  %1343 = vmatprep.mubr.msk.bf16.mxu1 %vm1568_vm2, %v1565_v7 }
 0x43d   :  { %737 = vst.msk [vmem:[#allocation2 + $0x14] sm:$0xf] %vm243_vm3, %v733_v30 }
 0x43f   :  { %v739_v37 = vpop.permute.xlu0 %738  ;;  %v708_v38 = vpop.permute.xlu1 %707 }
 0x440   :  { %744 = vst.msk [vmem:[#allocation2 + $0x18] sm:$0xf] %vm243_vm3, %v739_v37  ;;  %v1397_v39 = vld [vmem:[#allocation2 + $0x8] sm:$0xff]  }
 0x441   :  { %712 = vst.msk [vmem:[#allocation2 + $0x1c] sm:$0xf] %vm202_vm1, %v708_v38  ;;  %1336 = vmatpush3.bf16.msra.mxu0 %v1397_v39 }
 0x442   :  { %1347 = vmatprep.subr.bf16.mxu0 %v1565_v7 }
 0x443   :  { %v741_v41 = vpop.permute.xlu1 %740 }
 0x444   :  { %745 = vst.msk [vmem:[#allocation2 + $0x1c] sm:$0xf] %vm243_vm3, %v741_v41  ;;  %v1399_v42 = vld [vmem:[#allocation2 + $0x10] sm:$0xff]   ;;  %1338 = vmatmul.mubr.msk.bf16.vlgmr.msra.gmra.mxu0 %vm293_vm4, %v1398_v40 }
 0x445   :  { %1342 = vmatpush3.bf16.msra.mxu1 %v1399_v42  ;;  %1349 = vmatprep.mubr.msk.bf16.mxu0 %vm1568_vm2, %v1565_v7 }
 0x446   :  { %1353 = vmatprep.subr.bf16.mxu1 %v1403_v62 }
 0x448   :  { %1344 = vmatmul.mubr.msk.bf16.vlgmr.msra.gmra.mxu1 %vm293_vm4, %v1400_v43 }
 0x449   :  { %1354 = vmatpush3.bf16.msra.mxu1 %v1403_v62 }
 0x44a   :  { %1355 = vmatprep.subr.bf16.mxu1 %v1404_v0 }
 0x44b   :  { %v1401_v44 = vld [vmem:[#allocation2 + $0x18] sm:$0xff]  }
 0x44c   :  { %1348 = vmatpush3.bf16.msra.mxu0 %v1401_v44 }
 0x44d   :  { %1356 = vmatpush3.bf16.msra.mxu1 %v1404_v0 }
 0x44f   :  { %1350 = vmatmul.mubr.msk.bf16.vlgmr.msra.gmra.mxu0 %vm293_vm4, %v1402_v45 }
 0x4fb   :  { %v810_v46 = vpop.f32.mrf.mxu1 }
 0x4fc   :  { %v1253_v47 = vpack.c.bf16 %v810_v46, %v810_v46 }
 0x4fd   :  { %v1333_v48 = vpop.f32.mrf.mxu1 }
 0x4fe   :  { %993 = vst.msk [vmem:[#allocation3] sm:$0xf] %vm202_vm1, %v1253_v47  ;;  %1034 = vrot.lane.b32.xlu0 %v1253_v47, %s1567_s5 }
 0x4ff   :  { %v813_v49 = vpop.f32.mrf.mxu1 }
 0x500   :  { %v1254_v50 = vpack.c.bf16 %v813_v49, %v813_v49 }
 0x501   :  { %v1334_v51 = vpop.f32.mrf.mxu1 }
 0x502   :  { %994 = vst.msk [vmem:[#allocation3 + $0x4] sm:$0xf] %vm202_vm1, %v1254_v50  ;;  %1036 = vrot.lane.b32.xlu1 %v1254_v50, %s1567_s5 }
 0x504   :  { %v865_v7 = vpop.f32.mrf.mxu0 }
 0x505   :  { %v1255_v52 = vpack.c.bf16 %v865_v7, %v865_v7 }
 0x506   :  { %v1339_v53 = vpop.f32.mrf.mxu0 }
 0x507   :  { %1000 = vrot.lane.b32.xlu0 %v1255_v52, %s1566_s4 }
 0x508   :  { %v868_v54 = vpop.f32.mrf.mxu0  ;;  %v920_v55 = vpop.f32.mrf.mxu1 }
 0x509   :  { %v1256_v56 = vpack.c.bf16 %v868_v54, %v868_v54  ;;  %v1257_v57 = vpack.c.bf16 %v920_v55, %v920_v55 }
 0x50a   :  { %v1340_v58 = vpop.f32.mrf.mxu0  ;;  %v1345_v59 = vpop.f32.mrf.mxu1 }
 0x50b   :  { %1002 = vrot.lane.b32.xlu1 %v1256_v56, %s1566_s4  ;;  %1013 = vrot.lane.b32.xlu0 %v1257_v57, %s1571_s27 }
 0x50c   :  { %v923_v60 = vpop.f32.mrf.mxu1 }
 0x50d   :  { %v1258_v61 = vpack.c.bf16 %v923_v60, %v923_v60 }
 0x50e   :  { %v1346_v63 = vpop.f32.mrf.mxu1 }
 0x50f   :  { %v975_v1 = vpop.f32.mrf.mxu0  ;;  %1015 = vrot.lane.b32.xlu1 %v1258_v61, %s1571_s27  ;;  %1046 = vrot.lane.b32.xlu0 %v1257_v57, %s1566_s4 }
 0x510   :  { %v1259_v2 = vpack.c.bf16 %v975_v1, %v975_v1 }
 0x511   :  { %v1351_v3 = vpop.f32.mrf.mxu0 }
 0x513   :  { %v978_v4 = vpop.f32.mrf.mxu0  ;;  %1048 = vrot.lane.b32.xlu1 %v1258_v61, %s1566_s4  ;;  %1026 = vrot.lane.b32.xlu0 %v1259_v2, %s1572_s28 }
 0x514   :  { %v1260_v5 = vpack.c.bf16 %v978_v4, %v978_v4 }
 0x515   :  { %v1352_v6 = vpop.f32.mrf.mxu0 }
 0x517   :  { %1028 = vrot.lane.b32.xlu1 %v1260_v5, %s1572_s28  ;;  %1054 = vrot.lane.b32.xlu0 %v1259_v2, %s1571_s27 }
 0x51b   :  { %1056 = vrot.lane.b32.xlu1 %v1260_v5, %s1571_s27 }
 0x570   :  { %v1035_v8 = vpop.permute.xlu0 %1034 }
 0x571   :  { %1040 = vst.msk [vmem:[#allocation3 + $0x8] sm:$0xf] %vm202_vm1, %v1035_v8 }
 0x572   :  { %1044 = vst.msk [vmem:[#allocation3 + $0x8] sm:$0xf] %vm243_vm3, %v1255_v52 }
 0x574   :  { %v1037_v9 = vpop.permute.xlu1 %1036 }
 0x575   :  { %1041 = vst.msk [vmem:[#allocation3 + $0xc] sm:$0xf] %vm202_vm1, %v1037_v9 }
 0x576   :  { %1045 = vst.msk [vmem:[#allocation3 + $0xc] sm:$0xf] %vm243_vm3, %v1256_v56 }
 0x579   :  { %v1001_v10 = vpop.permute.xlu0 %1000 }
 0x57a   :  { %1006 = vst.msk [vmem:[#allocation3] sm:$0xf] %vm243_vm3, %v1001_v10 }
 0x57d   :  { %v1003_v11 = vpop.permute.xlu1 %1002  ;;  %v1014_v12 = vpop.permute.xlu0 %1013 }
 0x57e   :  { %1007 = vst.msk [vmem:[#allocation3 + $0x4] sm:$0xf] %vm243_vm3, %v1003_v11 }
 0x57f   :  { %1019 = vst.msk [vmem:[#allocation3] sm:$0xf] %vm548_vm5, %v1014_v12 }
 0x581   :  { %v1016_v13 = vpop.permute.xlu1 %1015  ;;  %v1047_v14 = vpop.permute.xlu0 %1046 }
 0x582   :  { %1020 = vst.msk [vmem:[#allocation3 + $0x4] sm:$0xf] %vm548_vm5, %v1016_v13  ;;  %1052 = vst.msk [vmem:[#allocation3 + $0x8] sm:$0xf] %vm548_vm5, %v1047_v14 }
 0x585   :  { %v1049_v15 = vpop.permute.xlu1 %1048  ;;  %v1027_v16 = vpop.permute.xlu0 %1026 }
 0x586   :  { %1053 = vst.msk [vmem:[#allocation3 + $0xc] sm:$0xf] %vm548_vm5, %v1049_v15 }
 0x587   :  { %1032 = vst.msk [vmem:[#allocation3] sm:$0xf] %vm562_vm6, %v1027_v16 }
 0x589   :  { %v1029_v17 = vpop.permute.xlu1 %1028  ;;  %v1055_v18 = vpop.permute.xlu0 %1054 }
 0x58a   :  { %1033 = vst.msk [vmem:[#allocation3 + $0x4] sm:$0xf] %vm562_vm6, %v1029_v17  ;;  %1060 = vst.msk [vmem:[#allocation3 + $0x8] sm:$0xf] %vm562_vm6, %v1055_v18 }
 0x58d   :  { %v1057_v19 = vpop.permute.xlu1 %1056 }
 0x58e   :  { %1061 = vst.msk [vmem:[#allocation3 + $0xc] sm:$0xf] %vm562_vm6, %v1057_v19 }
 0x591   :  { %v1405_v20 = vld [vmem:[#allocation3] sm:$0xff]  }
 0x592   :  { %1357 = vmatprep.mubr.msk.bf16.mxu1 %vm137_vm0, %v1405_v20 }
 0x595   :  { %v1406_v21 = vld [vmem:[#allocation3 + $0x8] sm:$0xff]  }
 0x596   :  { %1358 = vmatmul.mubr.msk.bf16.vlgmr.msra.gmra.mxu1 %vm137_vm0, %v1406_v21 }
 0x656   :  { %v1359_v22 = vpop.f32.mrf.mxu1 }
 0x657   :  { %1149 = vst.msk [vmem:[#allocation15 + $0x10] sm:$0xff] %vm137_vm0, %v1359_v22 }
 0x658   :  { %v1132_v23 = vpop.f32.mrf.mxu1 }
 0x659   :  { %1147 = vst.msk [vmem:[#allocation15] sm:$0xff] %vm137_vm0, %v1132_v23 }
 0x65a   :  { %v1360_v24 = vpop.f32.mrf.mxu1 }
 0x65b   :  { %1150 = vst.msk [vmem:[#allocation15 + $0x18] sm:$0xff] %vm137_vm0, %v1360_v24 }
 0x65c   :  { %v1135_v25 = vpop.f32.mrf.mxu1 }
 0x65d   :  { %1148 = vst.msk [vmem:[#allocation15 + $0x8] sm:$0xff] %vm137_vm0, %v1135_v25 }
 0x65e   :  { %1538 = shalt.err (!%p1535_p6)
}
 0x65f   :  { %s1574_s8 = smov 128  }
 0x660   :  { %1162 = dma.vmem_to_hbm [thread:$0]  %s1157_s30, 512, %s1810_s6, [#allocation6], %s1574_s8, %s1574_s8, %s1566_s4  }
 0x661   :  { %1555 = dma.done.wait [#allocation6], 512  }
 0x662   :  { %1556 = vsyncadd [#allocation6], 4294966784 }
 0x663   :  { %1166 = vsyncpa [#allocation5], 1 }
 0x664   :  { %1167 = vsyncpa [#allocation8], 1 }
 0x665   :  { %1168 = vsyncpa [#allocation11], 1 }
 0x666   :  { %1169 = vsyncpa [#allocation14], 1 }
 0x667   :  { %1170 = vsyncpa [#allocation6], 1 }

</bundles_post_ra>
